<compile_context>
chip_gen: v6e
topology: v6e:2x2x1
jax: 0.10.0
libtpu: 0.0.40
codegen_flags: <defaults>
</compile_context>

<pallas_src>
import functools

import jax
import jax.numpy as jnp
from jax.experimental import pallas as pl
from jax.experimental.pallas import tpu as pltpu


def _pass1_kernel(x_ref, w_ref, logits_ref, m_out_ref, l_out_ref,
                  m_sc, l_sc, *, n_valid, tile_n):
    """Tiled linear layer + online dim-0 softmax statistics.

    x_ref:      (tile_n, D)  f32   current batch tile
    w_ref:      (D, 2)       f32   resident weight (transposed nn.Linear)
    logits_ref: (tile_n, 2)  f32   staged logits for pass 2
    m_out_ref:  (1, 2)       f32   global per-column max   (written at last tile)
    l_out_ref:  (1, 2)       f32   global sum of exp(x - m) (written at last tile)
    m_sc, l_sc: (1, 2)       f32   VMEM scratch carrying the running stats
    """
    i = pl.program_id(0)

    @pl.when(i == 0)
    def _init():
        m_sc[...] = jnp.full_like(m_sc, -jnp.inf)
        l_sc[...] = jnp.zeros_like(l_sc)

    # Linear: (tile_n, D) @ (D, 2) on the MXU, f32 accumulation.
    logits = jnp.dot(x_ref[...], w_ref[...], preferred_element_type=jnp.float32)
    logits_ref[...] = logits

    # Mask rows past the true batch size (zero-padded rows must not influence
    # the dim-0 softmax statistics).
    row = i * tile_n + jax.lax.broadcasted_iota(jnp.int32, (tile_n, 2), 0)
    masked = jnp.where(row < n_valid, logits, -jnp.inf)

    # Online softmax update over the batch axis (per output column).
    m_old = m_sc[...]
    m_new = jnp.maximum(m_old, jnp.max(masked, axis=0, keepdims=True))   # (1, 2)
    alpha = jnp.exp(m_old - m_new)          # 0 on first update, 1 if max unchanged
    p_sum = jnp.sum(jnp.exp(masked - m_new), axis=0, keepdims=True)      # (1, 2)
    l_sc[...] = alpha * l_sc[...] + p_sum
    m_sc[...] = m_new

    @pl.when(i == pl.num_programs(0) - 1)
    def _finalize():
        m_out_ref[...] = m_sc[...]
        l_out_ref[...] = l_sc[...]


def _pass2_kernel(logits_ref, m_ref, l_ref, o_ref):
    """Normalize staged logits with the global dim-0 statistics."""
    e = jnp.exp(logits_ref[...] - m_ref[...])
    # Exact reciprocal: it is 2 scalars per tile and the kernel is HBM-bound,
    # so approx=True buys nothing but would loosen the tolerance.
    o_ref[...] = (e * pl.reciprocal(l_ref[...], approx=False)).astype(o_ref.dtype)


def _pick_tile_n(n, d, tile_cap, max_tile_bytes=4 << 20):
    """Batch-tile rows: multiple of 8, capped so 2x x-tile stays small in VMEM."""
    t = max(8, min(int(tile_cap), max_tile_bytes // max(1, d * 4)))
    t = (t // 8) * 8
    if n <= t:
        t = ((n + 7) // 8) * 8
    return t


def logreg_forward(x, w_t, *, tile_n=512):
    """x: (N, D) f32, w_t: (D, 2) f32 (transposed PyTorch Linear weight)."""
    n, d = x.shape
    assert w_t.shape == (d, 2)

    tile_n = _pick_tile_n(n, d, tile_n)
    n_tiles = pl.cdiv(n, tile_n)
    n_pad = n_tiles * tile_n
    if n_pad != n:
        x = jnp.pad(x, ((0, n_pad - n), (0, 0)))

    # ---- Pass 1: tiled matmul + online dim-0 max / sum-of-exp --------------
    kernel1 = functools.partial(_pass1_kernel, n_valid=n, tile_n=tile_n)
    logits, m, l = pl.pallas_call(
        kernel1,
        out_shape=(
            jax.ShapeDtypeStruct((n_pad, 2), jnp.float32),  # staged logits
            jax.ShapeDtypeStruct((1, 2), jnp.float32),      # global max
            jax.ShapeDtypeStruct((1, 2), jnp.float32),      # global sum(exp)
        ),
        grid=(n_tiles,),
        in_specs=[
            pl.BlockSpec((tile_n, d), lambda i: (i, 0)),    # x tile (pipelined)
            pl.BlockSpec((d, 2), lambda i: (0, 0)),         # weight (resident)
        ],
        out_specs=(
            pl.BlockSpec((tile_n, 2), lambda i: (i, 0)),
            pl.BlockSpec((1, 2), lambda i: (0, 0)),
            pl.BlockSpec((1, 2), lambda i: (0, 0)),
        ),
        scratch_shapes=[
            pltpu.VMEM((1, 2), jnp.float32),                # running max
            pltpu.VMEM((1, 2), jnp.float32),                # running sum
        ],
        compiler_params=pltpu.CompilerParams(
            dimension_semantics=("arbitrary",),             # dim-0 reduction axis
        ),
    )(x, w_t)

    # ---- Pass 2: normalize staged logits with global stats -----------------
    out = pl.pallas_call(
        _pass2_kernel,
        out_shape=jax.ShapeDtypeStruct((n_pad, 2), jnp.float32),
        grid=(n_tiles,),
        in_specs=[
            pl.BlockSpec((tile_n, 2), lambda i: (i, 0)),
            pl.BlockSpec((1, 2), lambda i: (0, 0)),
            pl.BlockSpec((1, 2), lambda i: (0, 0)),
        ],
        out_specs=pl.BlockSpec((tile_n, 2), lambda i: (i, 0)),
        compiler_params=pltpu.CompilerParams(
            dimension_semantics=("parallel",),
        ),
    )(logits, m, l)

    return out[:n]


def reference_forward(x, w_t):
    logits = jnp.dot(x, w_t, preferred_element_type=jnp.float32,
                     precision=jax.lax.Precision.HIGHEST)
    logits = logits - jnp.max(logits, axis=0, keepdims=True)
    e = jnp.exp(logits)
    return e / jnp.sum(e, axis=0, keepdims=True)


if __name__ == "__main__":
    # Small shapes consistent with the module; N deliberately NOT a multiple of
    # the tile so the padded/masked path and multi-tile pipeline are exercised.
    N, D = 300, 128
    key = jax.random.PRNGKey(0)
    kx, kw = jax.random.split(key)

    x = jax.random.normal(kx, (N, D), dtype=jnp.float32)

    # Deterministic init mimicking nn.Linear default U(-1/sqrt(D), 1/sqrt(D)),
    # use_bias=False (module default).  PyTorch stores (out, in); kernel uses W.T.
    bound = 1.0 / (D ** 0.5)
    w = jax.random.uniform(kw, (2, D), dtype=jnp.float32,
                           minval=-bound, maxval=bound)
    w_t = w.T                                              # (D, 2)

    out = jax.block_until_ready(logreg_forward(x, w_t, tile_n=128))  # 3 batch tiles
    ref = reference_forward(x, w_t)

    assert out.shape == (N, 2)
    assert bool(jnp.all(jnp.isfinite(out)))
    assert jnp.allclose(out, ref, atol=2e-5, rtol=1e-4), "mismatch vs reference"
    # Each column of a dim=0 softmax sums to 1.
    assert jnp.allclose(jnp.sum(out, axis=0), jnp.ones((2,)), atol=1e-4)

    print("KERNEL_OK")
</pallas_src>

<mosaic_0001>
module attributes {stable_mosaic.version = 11 : i64} {
  func.func @_pass1_kernel(%arg0: i32, %arg1: memref<128x128xf32, #tpu.memory_space<vmem>>, %arg2: memref<128x2xf32, #tpu.memory_space<vmem>>, %arg3: memref<128x2xf32, #tpu.memory_space<vmem>>, %arg4: memref<1x2xf32, #tpu.memory_space<vmem>>, %arg5: memref<1x2xf32, #tpu.memory_space<vmem>>, %arg6: memref<1x2xf32, #tpu.memory_space<vmem>>, %arg7: memref<1x2xf32, #tpu.memory_space<vmem>>) attributes {dimension_semantics = [#tpu.dimension_semantics<arbitrary>], iteration_bounds = array<i64: 3>, scalar_prefetch = 0 : i64, scratch_operands = 2 : i64, tpu.core_type = #tpu.core_type<tc>, window_params = [{transform_indices = @transform_0, window_bounds = array<i64: 128, 128>}, {pipeline_mode = #tpu.pipeline_mode<synchronous>, transform_indices = @transform_1, window_bounds = array<i64: 128, 2>}, {transform_indices = @transform_2, window_bounds = array<i64: 128, 2>}, {pipeline_mode = #tpu.pipeline_mode<synchronous>, transform_indices = @transform_3, window_bounds = array<i64: 1, 2>}, {pipeline_mode = #tpu.pipeline_mode<synchronous>, transform_indices = @transform_4, window_bounds = array<i64: 1, 2>}]} {
    %c0_i32 = arith.constant 0 : i32
    %0 = arith.cmpi eq, %arg0, %c0_i32 : i32
    %1 = arith.extui %0 : i1 to i32
    %c0_i32_0 = arith.constant 0 : i32
    %2 = arith.cmpi ne, %1, %c0_i32_0 : i32
    scf.if %2 {
      %cst_18 = arith.constant 0xFF800000 : f32
      %34 = vector.broadcast %cst_18 : f32 to vector<1x2xf32>
      %c0_19 = arith.constant 0 : index
      %c0_20 = arith.constant 0 : index
      %35 = vector.load %arg6[%c0_19, %c0_20] : memref<1x2xf32, #tpu.memory_space<vmem>>, vector<1x2xf32>
      tpu.vector_store %arg6[%c0_19, %c0_20], %34 {strides = array<i32>} : memref<1x2xf32, #tpu.memory_space<vmem>>, vector<1x2xf32>,
      %cst_21 = arith.constant 0.000000e+00 : f32
      %36 = vector.broadcast %cst_21 : f32 to vector<1x2xf32>
      %c0_22 = arith.constant 0 : index
      %c0_23 = arith.constant 0 : index
      %37 = vector.load %arg7[%c0_22, %c0_23] : memref<1x2xf32, #tpu.memory_space<vmem>>, vector<1x2xf32>
      tpu.vector_store %arg7[%c0_22, %c0_23], %36 {strides = array<i32>} : memref<1x2xf32, #tpu.memory_space<vmem>>, vector<1x2xf32>,
    } else {
    }
    %c0 = arith.constant 0 : index
    %c0_1 = arith.constant 0 : index
    %3 = vector.load %arg1[%c0, %c0_1] : memref<128x128xf32, #tpu.memory_space<vmem>>, vector<128x128xf32>
    %c0_2 = arith.constant 0 : index
    %c0_3 = arith.constant 0 : index
    %4 = vector.load %arg2[%c0_2, %c0_3] : memref<128x2xf32, #tpu.memory_space<vmem>>, vector<128x2xf32>
    %cst = arith.constant dense<0.000000e+00> : vector<128x2xf32>
    %5 = tpu.matmul %3, %4, %cst {dimension_numbers = #tpu.dot_dimension_numbers<[1], [0], [0], [1], [0, 0, 1, 1], [], []>} : vector<128x128xf32>, vector<128x2xf32>, vector<128x2xf32> -> vector<128x2xf32>
    %c0_4 = arith.constant 0 : index
    %c0_5 = arith.constant 0 : index
    %6 = vector.load %arg3[%c0_4, %c0_5] : memref<128x2xf32, #tpu.memory_space<vmem>>, vector<128x2xf32>
    tpu.vector_store %arg3[%c0_4, %c0_5], %5 {strides = array<i32>} : memref<128x2xf32, #tpu.memory_space<vmem>>, vector<128x2xf32>,
    %c128_i32 = arith.constant 128 : i32
    %7 = arith.muli %arg0, %c128_i32 : i32
    %8 = tpu.iota {dimensions = array<i32: 0>} : vector<128x2xi32>
    %9 = vector.broadcast %7 : i32 to vector<128x2xi32>
    %10 = arith.addi %9, %8 : vector<128x2xi32>
    %c300_i32 = arith.constant 300 : i32
    %11 = vector.broadcast %c300_i32 : i32 to vector<128x2xi32>
    %12 = arith.cmpi slt, %10, %11 : vector<128x2xi32>
    %cst_6 = arith.constant 0xFF800000 : f32
    %13 = vector.broadcast %cst_6 : f32 to vector<128x2xf32>
    %14 = arith.select %12, %5, %13 : vector<128x2xi1>, vector<128x2xf32>
    %c0_7 = arith.constant 0 : index
    %c0_8 = arith.constant 0 : index
    %15 = vector.load %arg6[%c0_7, %c0_8] : memref<1x2xf32, #tpu.memory_space<vmem>>, vector<1x2xf32>
    %cst_9 = arith.constant dense<0xFF800000> : vector<2xf32>
    %16 = vector.multi_reduction <maximumf>, %14, %cst_9 [0] : vector<128x2xf32> to vector<2xf32>
    %17 = vector.shape_cast %16 : vector<2xf32> to vector<1x2xf32>
    %18 = arith.maximumf %15, %17 : vector<1x2xf32>
    %19 = arith.subf %15, %18 : vector<1x2xf32>
    %20 = math.exp %19 : vector<1x2xf32>
    %21 = vector.broadcast %18 : vector<1x2xf32> to vector<128x2xf32>
    %22 = arith.subf %14, %21 : vector<128x2xf32>
    %23 = math.exp %22 : vector<128x2xf32>
    %cst_10 = arith.constant dense<0.000000e+00> : vector<2xf32>
    %24 = vector.multi_reduction <add>, %23, %cst_10 [0] : vector<128x2xf32> to vector<2xf32>
    %25 = vector.shape_cast %24 : vector<2xf32> to vector<1x2xf32>
    %c0_11 = arith.constant 0 : index
    %c0_12 = arith.constant 0 : index
    %26 = vector.load %arg7[%c0_11, %c0_12] : memref<1x2xf32, #tpu.memory_space<vmem>>, vector<1x2xf32>
    %27 = arith.mulf %20, %26 : vector<1x2xf32>
    %28 = arith.addf %27, %25 : vector<1x2xf32>
    %c0_13 = arith.constant 0 : index
    %c0_14 = arith.constant 0 : index
    %29 = vector.load %arg7[%c0_13, %c0_14] : memref<1x2xf32, #tpu.memory_space<vmem>>, vector<1x2xf32>
    tpu.vector_store %arg7[%c0_13, %c0_14], %28 {strides = array<i32>} : memref<1x2xf32, #tpu.memory_space<vmem>>, vector<1x2xf32>,
    %c0_15 = arith.constant 0 : index
    %c0_16 = arith.constant 0 : index
    %30 = vector.load %arg6[%c0_15, %c0_16] : memref<1x2xf32, #tpu.memory_space<vmem>>, vector<1x2xf32>
    tpu.vector_store %arg6[%c0_15, %c0_16], %18 {strides = array<i32>} : memref<1x2xf32, #tpu.memory_space<vmem>>, vector<1x2xf32>,
    %c2_i32 = arith.constant 2 : i32
    %31 = arith.cmpi eq, %arg0, %c2_i32 : i32
    %32 = arith.extui %31 : i1 to i32
    %c0_i32_17 = arith.constant 0 : i32
    %33 = arith.cmpi ne, %32, %c0_i32_17 : i32
    scf.if %33 {
      %c0_18 = arith.constant 0 : index
      %c0_19 = arith.constant 0 : index
      %34 = vector.load %arg6[%c0_18, %c0_19] : memref<1x2xf32, #tpu.memory_space<vmem>>, vector<1x2xf32>
      %c0_20 = arith.constant 0 : index
      %c0_21 = arith.constant 0 : index
      %35 = vector.load %arg4[%c0_20, %c0_21] : memref<1x2xf32, #tpu.memory_space<vmem>>, vector<1x2xf32>
      tpu.vector_store %arg4[%c0_20, %c0_21], %34 {strides = array<i32>} : memref<1x2xf32, #tpu.memory_space<vmem>>, vector<1x2xf32>,
      %c0_22 = arith.constant 0 : index
      %c0_23 = arith.constant 0 : index
      %36 = vector.load %arg7[%c0_22, %c0_23] : memref<1x2xf32, #tpu.memory_space<vmem>>, vector<1x2xf32>
      %c0_24 = arith.constant 0 : index
      %c0_25 = arith.constant 0 : index
      %37 = vector.load %arg5[%c0_24, %c0_25] : memref<1x2xf32, #tpu.memory_space<vmem>>, vector<1x2xf32>
      tpu.vector_store %arg5[%c0_24, %c0_25], %36 {strides = array<i32>} : memref<1x2xf32, #tpu.memory_space<vmem>>, vector<1x2xf32>,
    } else {
    }
    return
  }
  func.func @transform_0(%arg0: i32) -> (i32, i32) {
    %c0_i32 = arith.constant 0 : i32
    %c0_i32_0 = arith.constant 0 : i32
    return %arg0, %c0_i32 : i32, i32
  }
  func.func @transform_1(%arg0: i32) -> (i32, i32) {
    %c0_i32 = arith.constant 0 : i32
    %c0_i32_0 = arith.constant 0 : i32
    %c0_i32_1 = arith.constant 0 : i32
    return %c0_i32, %c0_i32_0 : i32, i32
  }
  func.func @transform_2(%arg0: i32) -> (i32, i32) {
    %c0_i32 = arith.constant 0 : i32
    %c0_i32_0 = arith.constant 0 : i32
    return %arg0, %c0_i32 : i32, i32
  }
  func.func @transform_3(%arg0: i32) -> (i32, i32) {
    %c0_i32 = arith.constant 0 : i32
    %c0_i32_0 = arith.constant 0 : i32
    %c0_i32_1 = arith.constant 0 : i32
    return %c0_i32, %c0_i32_0 : i32, i32
  }
  func.func @transform_4(%arg0: i32) -> (i32, i32) {
    %c0_i32 = arith.constant 0 : i32
    %c0_i32_0 = arith.constant 0 : i32
    %c0_i32_1 = arith.constant 0 : i32
    return %c0_i32, %c0_i32_0 : i32, i32
  }
}

</mosaic_0001>

<bundles_post_ra>
// kernel: tpu_custom_call.1
= control target key start
LH: loop header
LB: loop body
LE: loop exit
PB: predicated region body
PF: predicated region fallthrough
CT: control target
= control target key end

     0   :  { %10 = vsyncpa [#allocation5], 0  ;;  %s1521_s0 = inlined_call_operand.hbm [shape: f32[384,128], index: 0, kind: input, shape index: {}]   ;;  %s1522_s1 = inlined_call_operand.vmem [shape: f32[128,2], index: 1, kind: input, shape index: {}]   ;;  %s1523_s2 = inlined_call_operand.vmem [shape: f32[384,2], index: 2, kind: output, shape index: {0}]   ;;  %s1524_s3 = inlined_call_operand.hbm [shape: f32[1,2], index: 3, kind: output, shape index: {1}]   ;;  %s1525_s4 = inlined_call_operand.hbm [shape: f32[1,2], index: 4, kind: output, shape index: {2}]  }
   0x1   :  { %12 = vsyncpa [#allocation5 + $0x1], 0 }
   0x2   :  { %13 = vsyncpa [#allocation6], 0 }
   0x3   :  { %14 = vsyncpa [#allocation9], 0  ;;  %s1129_s15 = smov 0   ;;  %s1131_s16 = smov 0  }
   0x4   :  { %s1133_s17 = smov 0   ;;  %s1135_s18 = smov 0  }
   0x5 LB: > { %s1148_s19 = sadd.s32 4294967295, %s1095_s18   ;;  %s1151_s20 = sadd.s32 1, %s1095_s18   ;;  %s1095_s18 = sphi %s1135_s18, %s1534_s18   ;;  %s1091_s17 = sphi %s1133_s17, %s1533_s17   ;;  %s1087_s16 = sphi %s1131_s16, %s1532_s16   ;;  %s1083_s15 = sphi %s1129_s15, %s1531_s15  }
   0x6   : > { %s24_s21 = ssub.s32 %s1095_s18, %s1151_s20  ;;  %s27_s22 = sadd.s32 1, %s1091_s17 }
   0x7   : > { %p25_p0 = scmp.eq.s32.totalorder %s24_s21, 0  ;;  %p34_p1 = scmp.ne.s32.totalorder %s1091_s17, %s1087_s16 }
   0x8   : > { %p35_p2 = scmp.eq.s32.totalorder %s1095_s18, 0  ;;  %p40_p3 = scmp.ne.s32.totalorder %s1087_s16, %s1083_s15 }
   0x9   : > { %s1161_s23 = scalar_select %p25_p0, %s1091_s17, %s27_s22  }
   0xa   : > { %p36_p4 = por %p35_p2, %p34_p1  ;;  %p41_p5 = scmp.eq.s32.totalorder %s1148_s19, 0 }
   0xb   : > { %p900_p6 = scmp.lt.s32.totalorder %s1095_s18, 3  ;;  %s156_s25 = sand.u32 1, %s1091_s17  }
   0xc   : > { %p1165_p7 = por %p41_p5, %p40_p3  ;;  %s749_s26 = sshll.u32 %s156_s25, 7 }
   0xd   : > { %s765_s27 = sshll.u32 %s1095_s18, 11  ;;  %s160_s5 = scalar_lea.vmem [#allocation4], %s749_s26 }
   0xe   : > { %s1527_s24 = scalar_select %p1165_p7, 1, 0 }
   0xf   : > { %s1174_s30 = scalar_lea.hbm %s1521_s0, %s765_s27  ;;  %s167_s6 = sshll.u32 %s160_s5, 4  ;;  %s1176_s6 = int_to_ptr.vmem [resolvable:$true] %s167_s6 }
  0x10   : > { %p1178_p8 = pnand %p900_p6, %p36_p4  ;;  %s1183_s8 = scalar_lea.sflag [#allocation5], %s156_s25 }
  0x11   : > { %s977_s9 = scalar_lea.hbm %s1174_s30, 2048  ;;  %s982_s12 = scalar_lea.hbm %s1521_s0, 6144 }
  0x12   : > { %p978_p10 = scmp.ne.s32.totalorder %s1174_s30, %s977_s9  ;;  %p979_p11 = pneg %p1178_p8 }
  0x13   : > { %p983_p0 = scmp.lt.s32.totalorder %s1174_s30, %s1521_s0  ;;  %p984_p1 = scmp.lt.s32.totalorder %s982_s12, %s977_s9 }
  0x14   : > { %p980_p12 = pnand %p979_p11, %p978_p10 }
  0x15   : > { %p985_p2 = por %p984_p1, %p983_p0 }
  0x16   : > { %p981_p13 = pneg %p980_p12 }
  0x18   : > { %p986_p3 = pnand %p985_p2, %p981_p13 }
  0x1a   : > { %989 = shalt.err (!%p986_p3)
}
  0x1b   : > { %s990_s15 = scalar_lea.vmem %s1176_s6, 2048  ;;  %s1097_s21 = smov [#allocation4]  }
  0x1c   : > { %p991_p4 = scmp.ne.s32.totalorder %s1176_s6, %s990_s15  ;;  %s995_s22 = sshll.u32 %s1097_s21, 4  ;;  %s996_s22 = int_to_ptr.vmem [resolvable:$false] %s995_s22 }
  0x1d   : > { %s997_s25 = scalar_lea.vmem %s996_s22, 4096  ;;  %p998_p10 = scmp.lt.s32.totalorder %s1176_s6, %s996_s22 }
  0x1e   : > { %p993_p5 = pnand %p991_p4, %p979_p11  ;;  %p999_p12 = scmp.lt.s32.totalorder %s997_s25, %s990_s15 }
  0x20   : > { %p994_p6 = pneg %p993_p5  ;;  %p1000_p9 = por %p999_p12, %p998_p10 }
  0x22   : > { %p1001_p7 = pnand %p1000_p9, %p994_p6 }
  0x24   : > { %1004 = shalt.err (!%p1001_p7)
}
  0x25   : > { %s1098_s26 = smov 128   ;;  %s1099_s27 = smov 8  }
  0x26   : > { %899 = dma.hbm_to_vmem [thread:$0]  (!%p1178_p8), %s1174_s30, 2048, %s1176_s6, %s1183_s8, %s1098_s26, %s1098_s26, %s1099_s27  }
  0x27   : > { %p175_p11 = scmp.lt.s32.totalorder %s1095_s18, 4  ;;  %p1529_p13 = scmp.ge.s32.totalorder %s1095_s18, 1 }
  0x29   : > { %p176_p0 = pnand %p1529_p13, %p175_p11 }
  0x2a   : > { %s181_s28 = sand.u32 (!%p176_p0), 1, %s1087_s16   ;;  %p1530_p7 = scmp.ne.s32.totalorder (!%p176_p0), %s1527_s24, 0 }
  0x2b   : > { %179 = sbr.rel (%p176_p0) target bundleno = 427 (0x1ab), region = 28  ;;  %s753_s29 = sshll.u32 (!%p176_p0), %s181_s28, 7 }
  0x2c   : > { %s182_s5 = scalar_lea.sflag (!%p176_p0), [#allocation5], %s181_s28  ;;  %s1208_s9 = scalar_lea.vmem (!%p176_p0), [#allocation4], %s753_s29 }
  0x30   : > { %1070 = dma.done.wait (%p1530_p7), %s182_s5, 2048  }
  0x31   : > { %1072 = vsyncadd (%p1530_p7), %s182_s5, 4294965248  ;;  %s754_s10 = sshll.u32 %s1148_s19, 4  ;;  %p756_p8 = scmp.ne.s32.totalorder %s1148_s19, 0 }
  0x32   : > { %p212_p9 = scmp.lt.s32.totalorder %s754_s10, 47 }
  0x33   : > { %220 = sbr.rel (%p756_p8) target bundleno = 58 (0x3a), region = 36 }
  0x34   : > { %s1536_s10 = smov (!%p212_p9, %s754_s10), 47 }
  0x35   : > { %s755_s30 = sshll.u32 %s1536_s10, 3 }
  0x36   : > { %s1218_s7 = scalar_lea.vmem %s1523_s2, %s755_s30 }
  0x38   : > { %vm221_vm0 = vcmask 8192   ;;  %v1100_v0 = vmov -inf   ;;  %v1101_v1 = vmov 0.0  }
  0x39   : > { %222 = vst.msk [vmem:[#allocation2] sm:$0x1] %vm221_vm0, %v1100_v0  ;;  %223 = vst.msk [vmem:[#allocation3] sm:$0x1] %vm221_vm0, %v1101_v1 }
  0x3a PF: > { %v255_v2 = vld [vmem:[%s1522_s1 + $0x78] sm:$0xff]  ;;  %v254_v3 = vld [vmem:[%s1522_s1 + $0x70] sm:$0xff]  ;;  %v253_v4 = vld [vmem:[%s1522_s1 + $0x68] sm:$0xff]  ;;  %v419_v34 = vlaneseq  ;;  %s757_s29 = sshll.u32 %s1148_s19, 7  ;;  %vm401_vm1 = vcmask 15360   ;;  %p758_p1 = scmp.ne.s32.totalorder %s1148_s19, 2 }
  0x3b   : > { %798 = vmatprep.subr.mxu0 %v255_v2  ;;  %854 = vmatprep.subr.mxu1 %v255_v2  ;;  %v252_v5 = vld [vmem:[%s1522_s1 + $0x60] sm:$0xff]  ;;  %v251_v6 = vld [vmem:[%s1522_s1 + $0x58] sm:$0xff]  ;;  %v250_v7 = vld [vmem:[%s1522_s1 + $0x50] sm:$0xff]  ;;  %v436_v37 = vstv %s757_s29 }
  0x3c   : > { %799 = vmatpush3.msra.mxu0 %v255_v2  ;;  %870 = vmatpush3.msra.mxu1 %v255_v2  ;;  %v249_v8 = vld [vmem:[%s1522_s1 + $0x48] sm:$0xff]  ;;  %v248_v9 = vld [vmem:[%s1522_s1 + $0x40] sm:$0xff]  ;;  %v247_v10 = vld [vmem:[%s1522_s1 + $0x38] sm:$0xff]  ;;  %v1285_v35 = vshrl.u32 %v419_v34, 7 }
  0x3d   : > { %800 = vmatprep.subr.mxu0 %v254_v3  ;;  %855 = vmatprep.subr.mxu1 %v254_v3  ;;  %v246_v11 = vld [vmem:[%s1522_s1 + $0x30] sm:$0xff]  ;;  %v245_v12 = vld [vmem:[%s1522_s1 + $0x28] sm:$0xff]  ;;  %v244_v13 = vld [vmem:[%s1522_s1 + $0x20] sm:$0xff] }
  0x3e   : > { %801 = vmatpush3.msra.mxu0 %v254_v3  ;;  %871 = vmatpush3.msra.mxu1 %v254_v3  ;;  %v243_v14 = vld [vmem:[%s1522_s1 + $0x18] sm:$0xff]  ;;  %v242_v15 = vld [vmem:[%s1522_s1 + $0x10] sm:$0xff]  ;;  %v241_v16 = vld [vmem:[%s1522_s1 + $0x8] sm:$0xff]  ;;  %v421_v36 = vadd.s32 8, %v1285_v35  ;;  %v429_v38 = vadd.s32 72, %v1285_v35  ;;  %v423_v39 = vadd.s32 24, %v1285_v35  ;;  %v437_v48 = vadd.s32 %v436_v37, %v1285_v35 }
  0x3f   : > { %802 = vmatprep.subr.mxu0 %v253_v4  ;;  %856 = vmatprep.subr.mxu1 %v253_v4  ;;  %v240_v17 = vld [vmem:[%s1522_s1] sm:$0xff]  ;;  %v225_v19 = vld [vmem:[%s1208_s9 + $0x8] sm:$0xff]  ;;  %v226_v21 = vld [vmem:[%s1208_s9 + $0x10] sm:$0xff]  ;;  %v428_v40 = vadd.s32 64, %v1285_v35  ;;  %v425_v41 = vadd.s32 40, %v1285_v35  ;;  %v422_v42 = vadd.s32 16, %v1285_v35 }
  0x40   : > { %803 = vmatpush3.msra.mxu0 %v253_v4  ;;  %872 = vmatpush3.msra.mxu1 %v253_v4  ;;  %v224_v18 = vld [vmem:[%s1208_s9] sm:$0xff]  ;;  %v233_v22 = vld [vmem:[%s1208_s9 + $0x48] sm:$0xff]  ;;  %v234_v23 = vld [vmem:[%s1208_s9 + $0x50] sm:$0xff]  ;;  %v431_v43 = vadd.s32 88, %v1285_v35  ;;  %v430_v44 = vadd.s32 80, %v1285_v35  ;;  %v424_v45 = vadd.s32 32, %v1285_v35  ;;  %v438_v47 = vadd.s32 %v436_v37, %v421_v36 }
  0x41   : > { %804 = vmatprep.subr.mxu0 %v252_v5  ;;  %857 = vmatprep.subr.mxu1 %v252_v5  ;;  %v232_v20 = vld [vmem:[%s1208_s9 + $0x40] sm:$0xff]  ;;  %v227_v24 = vld [vmem:[%s1208_s9 + $0x18] sm:$0xff]  ;;  %v229_v28 = vld [vmem:[%s1208_s9 + $0x28] sm:$0xff]  ;;  %v433_v49 = vadd.s32 104, %v1285_v35  ;;  %v427_v50 = vadd.s32 56, %v1285_v35  ;;  %v446_v51 = vadd.s32 %v436_v37, %v429_v38  ;;  %v440_v52 = vadd.s32 %v436_v37, %v423_v39 }
  0x42   : > { %805 = vmatpush3.msra.mxu0 %v252_v5  ;;  %873 = vmatpush3.msra.mxu1 %v252_v5  ;;  %v228_v25 = vld [vmem:[%s1208_s9 + $0x20] sm:$0xff]  ;;  %v235_v26 = vld [vmem:[%s1208_s9 + $0x58] sm:$0xff]  ;;  %v230_v29 = vld [vmem:[%s1208_s9 + $0x30] sm:$0xff]  ;;  %v445_v53 = vadd.s32 %v436_v37, %v428_v40  ;;  %v432_v54 = vadd.s32 96, %v1285_v35  ;;  %v442_v57 = vadd.s32 %v436_v37, %v425_v41  ;;  %v426_v58 = vadd.s32 48, %v1285_v35 }
  0x43   : > { %806 = vmatprep.subr.mxu0 %v251_v6  ;;  %858 = vmatprep.subr.mxu1 %v251_v6  ;;  %v236_v27 = vld [vmem:[%s1208_s9 + $0x60] sm:$0xff]  ;;  %v237_v30 = vld [vmem:[%s1208_s9 + $0x68] sm:$0xff]  ;;  %v238_v31 = vld [vmem:[%s1208_s9 + $0x70] sm:$0xff]  ;;  %v435_v59 = vadd.s32 120, %v1285_v35  ;;  %v434_v60 = vadd.s32 112, %v1285_v35  ;;  %v439_v61 = vadd.s32 %v436_v37, %v422_v42  ;;  %v448_v62 = vadd.s32 %v436_v37, %v431_v43 }
  0x44   : > { %807 = vmatpush3.msra.mxu0 %v251_v6  ;;  %874 = vmatpush3.msra.mxu1 %v251_v6  ;;  %v231_v32 = vld [vmem:[%s1208_s9 + $0x38] sm:$0xff]  ;;  %v1310_v63 = vadd.s32 %v436_v37, %v430_v44  ;;  %v441_v0 = vadd.s32 %v436_v37, %v424_v45  ;;  %vm454_vm2 = vcmp.lt.s32.totalorder %v438_v47, 300  ;;  %vm453_vm3 = vcmp.lt.s32.totalorder %v437_v48, 300 }
  0x45   : > { %808 = vmatprep.subr.mxu0 %v250_v7  ;;  %859 = vmatprep.subr.mxu1 %v250_v7  ;;  %v239_v33 = vld [vmem:[%s1208_s9 + $0x78] sm:$0xff]  ;;  %v450_v3 = vadd.s32 %v436_v37, %v433_v49  ;;  %v444_v4 = vadd.s32 %v436_v37, %v427_v50  ;;  %vm462_vm4 = vcmp.lt.s32.totalorder %v446_v51, 300  ;;  %vm456_vm5 = vcmp.lt.s32.totalorder %v440_v52, 300 }
  0x46   : > { %809 = vmatpush3.msra.mxu0 %v250_v7  ;;  %875 = vmatpush3.msra.mxu1 %v250_v7  ;;  %vm461_vm6 = vcmp.lt.s32.totalorder %v445_v53, 300  ;;  %v449_v5 = vadd.s32 %v436_v37, %v432_v54  ;;  %vm458_vm7 = vcmp.lt.s32.totalorder %v442_v57, 300  ;;  %vm455_vm8 = vcmp.lt.s32.totalorder %v439_v61, 300 }
  0x47   : > { %810 = vmatprep.subr.mxu0 %v249_v8  ;;  %860 = vmatprep.subr.mxu1 %v249_v8  ;;  %vm464_vm9 = vcmp.lt.s32.totalorder %v448_v62, 300  ;;  %vm463_vm10 = vcmp.lt.s32.totalorder %v1310_v63, 300  ;;  %vm457_vm11 = vcmp.lt.s32.totalorder %v441_v0, 300  ;;  %vm466_vm12 = vcmp.lt.s32.totalorder %v450_v3, 300 }
  0x48   : > { %811 = vmatpush3.msra.mxu0 %v249_v8  ;;  %876 = vmatpush3.msra.mxu1 %v249_v8  ;;  %v443_v8 = vadd.s32 %v436_v37, %v426_v58  ;;  %vm460_vm13 = vcmp.lt.s32.totalorder %v444_v4, 300  ;;  %vm465_vm14 = vcmp.lt.s32.totalorder %v449_v5, 300 }
  0x49   : > { %812 = vmatprep.subr.mxu0 %v248_v9  ;;  %861 = vmatprep.subr.mxu1 %v248_v9 }
  0x4a   : > { %813 = vmatpush3.msra.mxu0 %v248_v9  ;;  %877 = vmatpush3.msra.mxu1 %v248_v9  ;;  %v452_v9 = vadd.s32 %v436_v37, %v435_v59  ;;  %vm459_vm15 = vcmp.lt.s32.totalorder %v443_v8, 300 }
  0x4b   : > { %814 = vmatprep.subr.mxu0 %v247_v10  ;;  %862 = vmatprep.subr.mxu1 %v247_v10 }
  0x4c   : > { %815 = vmatpush3.msra.mxu0 %v247_v10  ;;  %878 = vmatpush3.msra.mxu1 %v247_v10  ;;  %v1316_v10 = vadd.s32 %v436_v37, %v434_v60  ;;  %vm468_vm0 = vcmp.lt.s32.totalorder %v452_v9, 300  ;;  %v1421_v9 = vld [vmem:[#allocation2] sm:$0x1] }
  0x4d   : > { %816 = vmatprep.subr.mxu0 %v246_v11  ;;  %863 = vmatprep.subr.mxu1 %v246_v11 }
  0x4e   : > { %817 = vmatpush3.msra.mxu0 %v246_v11  ;;  %879 = vmatpush3.msra.mxu1 %v246_v11 }
  0x4f   : > { %818 = vmatprep.subr.mxu0 %v245_v12  ;;  %864 = vmatprep.subr.mxu1 %v245_v12 }
  0x50   : > { %819 = vmatpush3.msra.mxu0 %v245_v12  ;;  %880 = vmatpush3.msra.mxu1 %v245_v12 }
  0x51   : > { %820 = vmatprep.subr.mxu0 %v244_v13  ;;  %865 = vmatprep.subr.mxu1 %v244_v13 }
  0x52   : > { %821 = vmatpush3.msra.mxu0 %v244_v13  ;;  %881 = vmatpush3.msra.mxu1 %v244_v13 }
  0x53   : > { %822 = vmatprep.subr.mxu0 %v243_v14  ;;  %866 = vmatprep.subr.mxu1 %v243_v14 }
  0x54   : > { %823 = vmatpush3.msra.mxu0 %v243_v14  ;;  %882 = vmatpush3.msra.mxu1 %v243_v14 }
  0x55   : > { %824 = vmatprep.subr.mxu0 %v242_v15  ;;  %867 = vmatprep.subr.mxu1 %v242_v15 }
  0x56   : > { %825 = vmatpush3.msra.mxu0 %v242_v15  ;;  %883 = vmatpush3.msra.mxu1 %v242_v15 }
  0x57   : > { %826 = vmatprep.subr.mxu0 %v241_v16  ;;  %868 = vmatprep.subr.mxu1 %v241_v16 }
  0x58   : > { %827 = vmatpush3.msra.mxu0 %v241_v16  ;;  %884 = vmatpush3.msra.mxu1 %v241_v16 }
  0x59   : > { %828 = vmatprep.subr.mxu0 %v240_v17  ;;  %830 = vmatprep.mubr.f32.mxu0 %v224_v18 }
  0x5a   : > { %829 = vmatpush3.msra.mxu0 %v240_v17  ;;  %869 = vmatprep.subr.mxu1 %v240_v17 }
  0x5b   : > { %831 = vmatmul.mubr.f32.vlgmr.msra.gmra.mxu0 %v225_v19  ;;  %885 = vmatpush3.msra.mxu1 %v240_v17 }
  0x5c   : > { %842 = vmatprep.mubr.f32.mxu1 %v232_v20  ;;  %833 = vmatprep.mubr.f32.mxu0 %v226_v21 }
  0x5d   : > { %843 = vmatmul.mubr.f32.vlgmr.msra.gmra.mxu1 %v233_v22 }
  0x5e   : > { %845 = vmatprep.mubr.f32.mxu1 %v234_v23 }
  0x5f   : > { %834 = vmatmul.mubr.f32.gmra.mxu0 %v227_v24 }
  0x60   : > { %836 = vmatprep.mubr.f32.mxu0 %v228_v25 }
  0x61   : > { %846 = vmatmul.mubr.f32.gmra.mxu1 %v235_v26 }
  0x62   : > { %848 = vmatprep.mubr.f32.mxu1 %v236_v27 }
  0x63   : > { %837 = vmatmul.mubr.f32.gmra.mxu0 %v229_v28 }
  0x64   : > { %839 = vmatprep.mubr.f32.mxu0 %v230_v29 }
  0x65   : > { %849 = vmatmul.mubr.f32.gmra.mxu1 %v237_v30 }
  0x66   : > { %851 = vmatprep.mubr.f32.mxu1 %v238_v31 }
  0x67   : > { %840 = vmatmul.mubr.f32.gmra.mxu0 %v231_v32 }
  0x69   : > { %852 = vmatmul.mubr.f32.gmra.mxu1 %v239_v33 }
 0x11b   : > { %v832_v46 = vpop.f32.mrf.mxu0 }
 0x11c   : > { %403 = vst.msk [vmem:[%s1218_s7 + $0x8] sm:$0xff] %vm401_vm1, %v832_v46  ;;  %v1324_v11 = vsel %vm454_vm2, %v832_v46, -inf  ;;  %vm467_vm2 = vcmp.lt.s32.totalorder %v1316_v10, 300 }
 0x11d   : > { %v322_v55 = vpop.f32.mrf.mxu0  ;;  %v844_v56 = vpop.f32.mrf.mxu1  ;;  %v487_v21 = vsel %vm401_vm1, %v1324_v11, -inf }
 0x11e   : > { %402 = vst.msk [vmem:[%s1218_s7] sm:$0xff] %vm401_vm1, %v322_v55  ;;  %411 = vst.msk [vmem:[%s1218_s7 + $0x48] sm:$0xff] %vm401_vm1, %v844_v56  ;;  %v1327_v12 = vsel %vm453_vm3, %v322_v55, -inf  ;;  %v1330_v15 = vsel %vm462_vm4, %v844_v56, -inf  ;;  %vm621_vm3 = vcmask 8192  }
 0x11f   : > { %v835_v1 = vpop.f32.mrf.mxu0  ;;  %v362_v2 = vpop.f32.mrf.mxu1  ;;  %v486_v22 = vsel %vm401_vm1, %v1327_v12, -inf  ;;  %v500_v25 = vsel %vm401_vm1, %v1330_v15, -inf }
 0x120   : > { %405 = vst.msk [vmem:[%s1218_s7 + $0x18] sm:$0xff] %vm401_vm1, %v835_v1  ;;  %410 = vst.msk [vmem:[%s1218_s7 + $0x40] sm:$0xff] %vm401_vm1, %v362_v2  ;;  %v1333_v16 = vsel %vm456_vm5, %v835_v1, -inf  ;;  %v1350_v23 = vsel %vm461_vm6, %v362_v2, -inf }
 0x121   : > { %v332_v6 = vpop.f32.mrf.mxu0  ;;  %v847_v7 = vpop.f32.mrf.mxu1  ;;  %v489_v26 = vsel %vm401_vm1, %v1333_v16, -inf  ;;  %v498_v36 = vsel %vm401_vm1, %v1350_v23, -inf }
 0x122   : > { %404 = vst.msk [vmem:[%s1218_s7 + $0x10] sm:$0xff] %vm401_vm1, %v332_v6  ;;  %413 = vst.msk [vmem:[%s1218_s7 + $0x58] sm:$0xff] %vm401_vm1, %v847_v7  ;;  %v1364_v27 = vsel %vm455_vm8, %v332_v6, -inf  ;;  %v1369_v31 = vsel %vm464_vm9, %v847_v7, -inf }
 0x123   : > { %v838_v13 = vpop.f32.mrf.mxu0  ;;  %v372_v14 = vpop.f32.mrf.mxu1  ;;  %v488_v46 = vsel %vm401_vm1, %v1364_v27, -inf  ;;  %v504_v47 = vsel %vm401_vm1, %v1369_v31, -inf }
 0x124   : > { %407 = vst.msk [vmem:[%s1218_s7 + $0x28] sm:$0xff] %vm401_vm1, %v838_v13  ;;  %v1338_v17 = vsel %vm458_vm7, %v838_v13, -inf  ;;  %412 = vst.msk [vmem:[%s1218_s7 + $0x50] sm:$0xff] %vm401_vm1, %v372_v14  ;;  %v1382_v37 = vsel %vm463_vm10, %v372_v14, -inf  ;;  %v530_v13 = vsub.s32 0, %v1285_v35 }
 0x125   : > { %v492_v18 = vsel %vm401_vm1, %v1338_v17, -inf  ;;  %v342_v19 = vpop.f32.mrf.mxu0  ;;  %v850_v20 = vpop.f32.mrf.mxu1  ;;  %v502_v51 = vsel %vm401_vm1, %v1382_v37, -inf }
 0x126   : > { %406 = vst.msk [vmem:[%s1218_s7 + $0x20] sm:$0xff] %vm401_vm1, %v342_v19  ;;  %v1355_v24 = vsel %vm457_vm11, %v342_v19, -inf  ;;  %415 = vst.msk [vmem:[%s1218_s7 + $0x68] sm:$0xff] %vm401_vm1, %v850_v20  ;;  %v493_v32 = vmax.f32 %v487_v21, %v492_v18  ;;  %v1385_v38 = vsel %vm466_vm12, %v850_v20, -inf }
 0x127   : > { %v490_v28 = vsel %vm401_vm1, %v1355_v24, -inf  ;;  %v841_v29 = vpop.f32.mrf.mxu0  ;;  %v382_v30 = vpop.f32.mrf.mxu1  ;;  %v508_v55 = vsel %vm401_vm1, %v1385_v38, -inf }
 0x128   : > { %v491_v33 = vmax.f32 %v486_v22, %v490_v28  ;;  %409 = vst.msk [vmem:[%s1218_s7 + $0x38] sm:$0xff] %vm401_vm1, %v841_v29  ;;  %v1374_v34 = vsel %vm460_vm13, %v841_v29, -inf  ;;  %414 = vst.msk [vmem:[%s1218_s7 + $0x60] sm:$0xff] %vm401_vm1, %v382_v30  ;;  %v1390_v43 = vsel %vm465_vm14, %v382_v30, -inf  ;;  %v501_v52 = vmax.f32 %v493_v32, %v500_v25 }
 0x129   : > { %v496_v39 = vsel %vm401_vm1, %v1374_v34, -inf  ;;  %v352_v40 = vpop.f32.mrf.mxu0  ;;  %v853_v41 = vpop.f32.mrf.mxu1  ;;  %v506_v56 = vsel %vm401_vm1, %v1390_v43, -inf }
 0x12a   : > { %v497_v42 = vmax.f32 %v489_v26, %v496_v39  ;;  %v499_v44 = vmax.f32 %v491_v33, %v498_v36  ;;  %408 = vst.msk [vmem:[%s1218_s7 + $0x30] sm:$0xff] %vm401_vm1, %v352_v40  ;;  %v475_v45 = vsel %vm459_vm15, %v352_v40, -inf  ;;  %417 = vst.msk [vmem:[%s1218_s7 + $0x78] sm:$0xff] %vm401_vm1, %v853_v41  ;;  %v1403_v49 = vsel %vm468_vm0, %v853_v41, -inf }
 0x12b   : > { %v494_v48 = vsel %vm401_vm1, %v475_v45, -inf  ;;  %v392_v50 = vpop.f32.mrf.mxu1  ;;  %v512_v57 = vsel %vm401_vm1, %v1403_v49, -inf  ;;  %v509_v62 = vmax.f32 %v501_v52, %v508_v55 }
 0x12c   : > { %v495_v53 = vmax.f32 %v488_v46, %v494_v48  ;;  %v505_v54 = vmax.f32 %v497_v42, %v504_v47  ;;  %416 = vst.msk [vmem:[%s1218_s7 + $0x70] sm:$0xff] %vm401_vm1, %v392_v50  ;;  %v1417_v58 = vsel %vm467_vm2, %v392_v50, -inf  ;;  %v507_v59 = vmax.f32 %v499_v44, %v506_v56 }
 0x12d   : > { %v510_v61 = vsel %vm401_vm1, %v1417_v58, -inf }
 0x12e   : > { %v503_v60 = vmax.f32 %v495_v53, %v502_v51  ;;  %v513_v63 = vmax.f32 %v505_v54, %v512_v57  ;;  %v514_v1 = vmax.f32 %v507_v59, %v509_v62 }
 0x130   : > { %v511_v0 = vmax.f32 %v503_v60, %v510_v61 }
 0x132   : > { %v515_v2 = vmax.f32 %v511_v0, %v513_v63 }
 0x134   : > { %v516_v3 = vmax.f32 %v514_v1, %v515_v2 }
 0x136   : > { %v517_v4 = vrot.slane %v516_v3, 4 }
 0x138   : > { %v518_v5 = vmax.f32 %v516_v3, %v517_v4 }
 0x13a   : > { %v519_v6 = vrot.slane %v518_v5, 2 }
 0x13c   : > { %v520_v7 = vmax.f32 %v518_v5, %v519_v6 }
 0x13e   : > { %v521_v8 = vrot.slane %v520_v7, 1 }
 0x140   : > { %v522_v10 = vmax.f32 %v520_v7, %v521_v8 }
 0x142   : > { %v1425_v14 = vmax.f32 %v1421_v9, %v522_v10 }
 0x144   : > { %v1428_v18 = vrot.slane %v1425_v14, %v530_v13  ;;  %623 = vst.msk [vmem:[#allocation2] sm:$0x1] %vm621_vm3, %v1425_v14 }
 0x146   : > { %v533_v19 = vsub.f32 %v1327_v12, %v1428_v18  ;;  %v534_v20 = vsub.f32 %v1324_v11, %v1428_v18  ;;  %v535_v21 = vsub.f32 %v1364_v27, %v1428_v18  ;;  %v536_v35 = vsub.f32 %v1333_v16, %v1428_v18 }
 0x147   : > { %v537_v22 = vsub.f32 %v1355_v24, %v1428_v18  ;;  %v538_v28 = vsub.f32 %v1338_v17, %v1428_v18  ;;  %v539_v12 = vsub.f32 %v475_v45, %v1428_v18  ;;  %v540_v27 = vsub.f32 %v1374_v34, %v1428_v18 }
 0x148   : > { %v549_v25 = vmul.f32 1.442695, %v533_v19  ;;  %v551_v26 = vmul.f32 1.442695, %v534_v20  ;;  %v553_v29 = vmul.f32 1.442695, %v535_v21  ;;  %v541_v24 = vsub.f32 %v1350_v23, %v1428_v18 }
 0x149   : > { %v555_v30 = vmul.f32 1.442695, %v536_v35  ;;  %v557_v11 = vmul.f32 1.442695, %v537_v22  ;;  %v559_v16 = vmul.f32 1.442695, %v538_v28  ;;  %v542_v17 = vsub.f32 %v1330_v15, %v1428_v18 }
 0x14a   : > { %943 = vpow2.f32 %v549_v25  ;;  %v561_v32 = vmul.f32 1.442695, %v539_v12  ;;  %v563_v33 = vmul.f32 1.442695, %v540_v27  ;;  %v543_v36 = vsub.f32 %v1382_v37, %v1428_v18 }
 0x14b   : > { %945 = vpow2.f32 %v551_v26  ;;  %v565_v39 = vmul.f32 1.442695, %v541_v24  ;;  %v544_v34 = vsub.f32 %v1369_v31, %v1428_v18  ;;  %v567_v40 = vmul.f32 1.442695, %v542_v17 }
 0x14c   : > { %947 = vpow2.f32 %v553_v29  ;;  %v545_v23 = vsub.f32 %v1390_v43, %v1428_v18  ;;  %v569_v42 = vmul.f32 1.442695, %v543_v36  ;;  %v546_v37 = vsub.f32 %v1385_v38, %v1428_v18 }
 0x14d   : > { %949 = vpow2.f32 %v555_v30  ;;  %v571_v46 = vmul.f32 1.442695, %v544_v34  ;;  %v547_v50 = vsub.f32 %v1417_v58, %v1428_v18  ;;  %v548_v54 = vsub.f32 %v1403_v49, %v1428_v18 }
 0x14e   : > { %951 = vpow2.f32 %v557_v11  ;;  %v573_v43 = vmul.f32 1.442695, %v545_v23  ;;  %v575_v38 = vmul.f32 1.442695, %v546_v37  ;;  %v524_v19 = vsub.f32 %v1421_v9, %v1425_v14 }
 0x14f   : > { %953 = vpow2.f32 %v559_v16  ;;  %v577_v59 = vmul.f32 1.442695, %v547_v50  ;;  %v579_v62 = vmul.f32 1.442695, %v548_v54 }
 0x150   : > { %955 = vpow2.f32 %v561_v32  ;;  %v525_v28 = vmul.f32 1.442695, %v524_v19 }
 0x151   : > { %957 = vpow2.f32 %v563_v33 }
 0x152   : > { %959 = vpow2.f32 %v565_v39 }
 0x153   : > { %961 = vpow2.f32 %v567_v40 }
 0x154   : > { %963 = vpow2.f32 %v569_v42 }
 0x155   : > { %965 = vpow2.f32 %v571_v46 }
 0x156   : > { %967 = vpow2.f32 %v573_v43 }
 0x157   : > { %v944_v41 = vpop.eup %943  ;;  %969 = vpow2.f32 %v575_v38 }
 0x158   : > { %v946_v44 = vpop.eup %945  ;;  %v581_v15 = vsel %vm401_vm1, %v944_v41, 0.0  ;;  %971 = vpow2.f32 %v577_v59  ;;  %v618_v41 = vld [vmem:[#allocation3] sm:$0x1] }
 0x159   : > { %v948_v45 = vpop.eup %947  ;;  %v582_v47 = vsel %vm401_vm1, %v946_v44, 0.0  ;;  %973 = vpow2.f32 %v579_v62 }
 0x15a   : > { %v950_v31 = vpop.eup %949  ;;  %v583_v48 = vadd.f32 %v582_v47, %v581_v15  ;;  %v584_v51 = vsel %vm401_vm1, %v948_v45, 0.0  ;;  %975 = vpow2.f32 %v525_v28 }
 0x15b   : > { %v952_v52 = vpop.eup %951  ;;  %v586_v55 = vsel %vm401_vm1, %v950_v31, 0.0 }
 0x15c   : > { %v585_v53 = vadd.f32 %v584_v51, %v583_v48  ;;  %v954_v56 = vpop.eup %953  ;;  %v588_v60 = vsel %vm401_vm1, %v952_v52, 0.0 }
 0x15d   : > { %v956_v58 = vpop.eup %955  ;;  %v590_v63 = vsel %vm401_vm1, %v954_v56, 0.0 }
 0x15e   : > { %v587_v57 = vadd.f32 %v586_v55, %v585_v53  ;;  %v958_v0 = vpop.eup %957  ;;  %v592_v49 = vsel %vm401_vm1, %v956_v58, 0.0 }
 0x15f   : > { %v960_v2 = vpop.eup %959  ;;  %v594_v4 = vsel %vm401_vm1, %v958_v0, 0.0 }
 0x160   : > { %v589_v61 = vadd.f32 %v588_v60, %v587_v57  ;;  %v962_v5 = vpop.eup %961  ;;  %v596_v7 = vsel %vm401_vm1, %v960_v2, 0.0 }
 0x161   : > { %v964_v8 = vpop.eup %963  ;;  %v598_v13 = vsel %vm401_vm1, %v962_v5, 0.0 }
 0x162   : > { %v591_v1 = vadd.f32 %v590_v63, %v589_v61  ;;  %v966_v18 = vpop.eup %965  ;;  %v600_v21 = vsel %vm401_vm1, %v964_v8, 0.0 }
 0x163   : > { %v968_v35 = vpop.eup %967  ;;  %v602_v25 = vsel %vm401_vm1, %v966_v18, 0.0 }
 0x164   : > { %v593_v3 = vadd.f32 %v592_v49, %v591_v1  ;;  %v970_v26 = vpop.eup %969  ;;  %v604_v30 = vsel %vm401_vm1, %v968_v35, 0.0 }
 0x165   : > { %v972_v12 = vpop.eup %971  ;;  %v606_v27 = vsel %vm401_vm1, %v970_v26, 0.0 }
 0x166   : > { %v595_v6 = vadd.f32 %v594_v4, %v593_v3  ;;  %v974_v16 = vpop.eup %973  ;;  %v608_v9 = vsel %vm401_vm1, %v972_v12, 0.0 }
 0x167   : > { %v610_v32 = vsel %vm401_vm1, %v974_v16, 0.0  ;;  %v976_v40 = vpop.eup %975 }
 0x168   : > { %v597_v10 = vadd.f32 %v596_v7, %v595_v6  ;;  %v619_v44 = vmul.f32 %v976_v40, %v618_v41 }
 0x16a   : > { %v599_v20 = vadd.f32 %v598_v13, %v597_v10 }
 0x16c   : > { %v601_v22 = vadd.f32 %v600_v21, %v599_v20 }
 0x16e   : > { %v603_v29 = vadd.f32 %v602_v25, %v601_v22 }
 0x170   : > { %v605_v11 = vadd.f32 %v604_v30, %v603_v29 }
 0x172   : > { %v607_v24 = vadd.f32 %v606_v27, %v605_v11 }
 0x174   : > { %v609_v14 = vadd.f32 %v608_v9, %v607_v24 }
 0x176   : > { %v611_v17 = vadd.f32 %v610_v32, %v609_v14 }
 0x178   : > { %v612_v33 = vrot.slane %v611_v17, 4 }
 0x17a   : > { %v613_v36 = vadd.f32 %v612_v33, %v611_v17 }
 0x17c   : > { %v614_v39 = vrot.slane %v613_v36, 2 }
 0x17e   : > { %v615_v34 = vadd.f32 %v614_v39, %v613_v36 }
 0x180   : > { %v616_v23 = vrot.slane %v615_v34, 1 }
 0x182   : > { %v617_v42 = vadd.f32 %v616_v23, %v615_v34  ;;  %627 = sbr.rel (%p758_p1) target bundleno = 399 (0x18f), region = 40 }
 0x184   : > { %v620_v15 = vadd.f32 %v619_v44, %v617_v42 }
 0x186   : > { %622 = vst.msk [vmem:[#allocation3] sm:$0x1] %vm621_vm3, %v620_v15 }
 0x187   : > { %v628_v45 = vld [vmem:[#allocation2] sm:$0x1] }
 0x188   : > { %629 = vst.msk [vmem:[#allocation7] sm:$0x1] %vm621_vm3, %v628_v45 }
 0x18d   : > { %v630_v37 = vld [vmem:[#allocation3] sm:$0x1] }
 0x18e   : > { %631 = vst.msk [vmem:[#allocation8] sm:$0x1] %vm621_vm3, %v630_v37 }
 0x18f PF: > { %p901_p2 = scmp.eq.s32.totalorder %s1148_s19, 2  ;;  %s1102_s9 = smov [#allocation7]  }
 0x190   : > { %s648_s7 = sshll.u32 %s1102_s9, 4  ;;  %s1103_s5 = smov [#allocation8]   ;;  %s649_s7 = int_to_ptr.vmem [resolvable:$true] %s648_s7 }
 0x191   : > { %s659_s10 = sshll.u32 %s1103_s5, 4  ;;  %s1005_s30 = scalar_lea.vmem %s649_s7, 16  ;;  %s660_s10 = int_to_ptr.vmem [resolvable:$true] %s659_s10 }
 0x192   : > { %p1006_p3 = scmp.ne.s32.totalorder %s649_s7, %s1005_s30  ;;  %s1011_s18 = scalar_lea.vmem %s649_s7, 32 }
 0x193   : > { %p1012_p6 = scmp.lt.s32.totalorder %s649_s7, %s649_s7  ;;  %p1013_p10 = scmp.lt.s32.totalorder %s1011_s18, %s1005_s30 }
 0x194   : > { %p1007_p4 = pnand %p1006_p3, %p901_p2 }
 0x195   : > { %p1014_p12 = por %p1013_p10, %p1012_p6 }
 0x196   : > { %p1008_p5 = pneg %p1007_p4 }
 0x198   : > { %p1015_p11 = pnand %p1014_p12, %p1008_p5 }
 0x19a   : > { %1018 = shalt.err (!%p1015_p11)
}
 0x19b   : > { %889 = dma.vmem_to_hbm [thread:$0]  (%p901_p2), %s649_s7, 16, %s1524_s3, [#allocation6]  }
 0x19c   : > { %s1029_s8 = scalar_lea.vmem %s660_s10, 16  ;;  %s1035_s11 = scalar_lea.vmem %s660_s10, 32 }
 0x19d   : > { %p1030_p13 = scmp.ne.s32.totalorder %s660_s10, %s1029_s8  ;;  %p1036_p9 = scmp.lt.s32.totalorder %s660_s10, %s660_s10 }
 0x19e   : > { %p1037_p8 = scmp.lt.s32.totalorder %s1035_s11, %s1029_s8 }
 0x19f   : > { %p1031_p0 = pnand %p1030_p13, %p901_p2 }
 0x1a0   : > { %p1038_p1 = por %p1037_p8, %p1036_p9 }
 0x1a1   : > { %p1032_p7 = pneg %p1031_p0 }
 0x1a3   : > { %p1039_p3 = pnand %p1038_p1, %p1032_p7 }
 0x1a5   : > { %1042 = shalt.err (!%p1039_p3)
}
 0x1a6   : > { %891 = dma.vmem_to_hbm [thread:$0]  (%p901_p2), %s660_s10, 16, %s1525_s4, [#allocation9]  }
 0x1a7   : > { %1074 = dma.done.wait (%p901_p2), [#allocation6], 16  }
 0x1a8   : > { %1076 = vsyncadd (%p901_p2), [#allocation6], 4294967280 }
 0x1a9   : > { %1078 = dma.done.wait (%p901_p2), [#allocation9], 16  }
 0x1aa   : > { %1080 = vsyncadd (%p901_p2), [#allocation9], 4294967280 }
 0x1ab PF: > { %p17_p4 = scmp.ge.s32.totalorder %s1151_s20, 5   ;;  %s1531_s15 = smov %s1087_s16 }
 0x1ac   : > { %s1532_s16 = smov %s1091_s17  ;;  %s1533_s17 = smov %s1161_s23 }
 0x1ad   : > { %s1534_s18 = smov %s1151_s20  ;;  %19 = sbr.rel (!%p17_p4) target bundleno = 5 (0x5), region = 93 }
 0x1b2   :  { %684 = vsyncpa [#allocation5], 1 }
 0x1b3   :  { %686 = vsyncpa [#allocation5 + $0x1], 1 }
 0x1b4   :  { %687 = vsyncpa [#allocation6], 1 }
 0x1b5   :  { %689 = vsyncpa [#allocation6 + $0x1], 1 }
 0x1b6   :  { %690 = vsyncpa [#allocation9], 1 }

</bundles_post_ra>
